<compile_context>
chip_gen: v6e
topology: v6e:2x2x1
jax: 0.10.0
libtpu: 0.0.40
codegen_flags: <defaults>
</compile_context>

<pallas_src>
import math

import jax
import jax.numpy as jnp
from jax import lax
from jax.experimental import pallas as pl
from jax.experimental.pallas import tpu as pltpu


# --------------------------------------------------------------------------
# Kernels
# --------------------------------------------------------------------------
def _kv_proj_kernel(ctx_ref, wkv_ref, k_ref, v_ref):
    """Project one context tile to K and V with a single fused (C, 2*Hp) matmul."""
    hp = k_ref.shape[-1]
    ctx = ctx_ref[0]                                              # (tsp, C) bf16
    kv = jnp.dot(ctx, wkv_ref[...], preferred_element_type=jnp.float32)  # (tsp, 2*Hp) f32
    k_ref[0] = kv[:, :hp].astype(k_ref.dtype)
    v_ref[0] = kv[:, hp:].astype(v_ref.dtype)


def _flash_cross_attn_kernel(x_ref, k_ref, v_ref, wq_ref, o_ref,
                             q_sc, m_sc, l_sc, acc_sc):
    # x_ref:  (1, TQ, C)   query-input tile for the current batch element
    # k_ref:  (1, TS, Hp)  pre-projected key tile for the current S step
    # v_ref:  (1, TS, Hp)  pre-projected value tile for the current S step
    # wq_ref: (C, Hp)      query weight (1/sqrt(C) scale already folded in)
    # o_ref:  (1, TQ, Hp)
    si = pl.program_id(2)

    @pl.when(si == 0)
    def _init():
        # Project queries once per (batch, q-tile); bf16 for the MXU.
        q = jnp.dot(x_ref[0], wq_ref[...], preferred_element_type=jnp.float32)
        q_sc[...] = q.astype(q_sc.dtype)
        m_sc[...] = jnp.full(m_sc.shape, -jnp.inf, dtype=m_sc.dtype)
        l_sc[...] = jnp.zeros(l_sc.shape, dtype=l_sc.dtype)
        acc_sc[...] = jnp.zeros(acc_sc.shape, dtype=acc_sc.dtype)

    k = k_ref[0]                                                  # (TS, Hp) bf16
    v = v_ref[0]                                                  # (TS, Hp) bf16

    # q @ k^T contracted over the head dim without materializing k.T.
    s = lax.dot_general(q_sc[...], k,
                        dimension_numbers=(((1,), (1,)), ((), ())),
                        preferred_element_type=jnp.float32)       # (TQ, TS) f32

    # Online (flash) softmax update across S tiles.
    m_prev = m_sc[...]
    m_new = jnp.maximum(m_prev, jnp.max(s, axis=-1, keepdims=True))
    alpha = jnp.exp(m_prev - m_new)
    p = jnp.exp(s - m_new)
    l_sc[...] = alpha * l_sc[...] + jnp.sum(p, axis=-1, keepdims=True)
    acc_sc[...] = alpha * acc_sc[...] + jnp.dot(
        p.astype(v.dtype), v, preferred_element_type=jnp.float32)  # bf16 PV, f32 acc
    m_sc[...] = m_new

    # attn_dropout is identity in eval mode.
    # TODO(synk): training-mode dropout -> pltpu.prng_seed/prng_random_bits mask on p.

    @pl.when(si == pl.num_programs(2) - 1)
    def _finalize():
        # Exact divide (tq x Hp elements): negligible cost, tighter numerics
        # than the approximate EUP reciprocal.
        o_ref[0] = (acc_sc[...] / l_sc[...]).astype(o_ref.dtype)


# --------------------------------------------------------------------------
# Tiling / VMEM helpers
# --------------------------------------------------------------------------
def _row_multiple(dtype):
    """Minimum second-to-last tile dim: 8 for f32, 16 for bf16, 32 for int8/fp8."""
    return max(8, 32 // jnp.dtype(dtype).itemsize)


def _pick_tile(dim, target, multiple):
    """Largest tile <= target that divides dim and is a multiple of `multiple`.

    Falls back to the full dimension (always legal) if no such divisor exists;
    for very long prime-ish dims this can raise the VMEM footprint, so the
    vmem_limit below is derived from the *actual* tile sizes.
    """
    if dim <= target:
        return dim
    t = (target // multiple) * multiple
    while t >= multiple:
        if dim % t == 0:
            return t
        t -= multiple
    return dim


def _flash_vmem_bytes(tq, ts, C, hp, in_item, out_item):
    est = 2 * tq * C * in_item          # x tile (double-buffered)
    est += 2 * 2 * ts * hp * in_item    # k, v tiles
    est += 2 * C * hp * in_item         # wq (constant block, default 2 buffers)
    est += 2 * tq * hp * out_item       # output tile
    est += tq * hp * in_item            # q scratch
    est += tq * hp * 4                  # f32 accumulator
    est += 2 * tq * 128 * 4             # m, l (lane-padded)
    est += 2 * tq * ts * 4              # s, p temporaries
    return est


def _proj_vmem_bytes(tsp, C, hp, in_item):
    est = 2 * tsp * C * in_item         # ctx tile
    est += 2 * C * 2 * hp * in_item     # fused wkv weight
    est += 2 * 2 * tsp * hp * in_item   # k, v output tiles
    est += tsp * 2 * hp * 4             # f32 matmul result
    return est


def _vmem_limit(estimate_bytes):
    # Headroom x2 over the analytic estimate, floored at the 32 MiB default and
    # capped below v7x's 64 MiB physical VMEM.
    return int(min(60 * 1024 * 1024, max(32 * 1024 * 1024, 2 * estimate_bytes)))


# --------------------------------------------------------------------------
# Wrapper
# --------------------------------------------------------------------------
def cross_attention_head(x, context, wq, wk, wv, *, tq=None, ts=None,
                         compute_dtype=jnp.bfloat16):
    """x: (B, T, C); context: (B, S, C); wq/wk/wv: (C, H). Returns (B, T, H)."""
    B, T, C = x.shape
    _, S, _ = context.shape
    H = wq.shape[1]
    out_dtype = x.dtype

    # Lane-dense output: zero-pad the head dim to a multiple of 128. Padded
    # q/k columns contribute 0 to q@k^T and padded v columns stay 0 in the
    # output; the wrapper slices them off below.
    hp = ((H + 127) // 128) * 128

    # Fold the 1/sqrt(C) score scale into Wq once (f32 math, then cast).
    scale = 1.0 / math.sqrt(float(C))
    wq_f = wq.astype(jnp.float32) * scale
    wk_f = wk.astype(jnp.float32)
    wv_f = wv.astype(jnp.float32)
    if hp != H:
        pad = ((0, 0), (0, hp - H))
        wq_f, wk_f, wv_f = jnp.pad(wq_f, pad), jnp.pad(wk_f, pad), jnp.pad(wv_f, pad)

    # bf16 operands for the MXU (f32 accumulation stays inside the kernels).
    wq_c = wq_f.astype(compute_dtype)
    wkv_c = jnp.concatenate([wk_f, wv_f], axis=1).astype(compute_dtype)  # (C, 2*Hp)
    x_c = x.astype(compute_dtype)
    ctx_c = context.astype(compute_dtype)

    in_item = jnp.dtype(compute_dtype).itemsize
    out_item = jnp.dtype(out_dtype).itemsize
    row_mult = _row_multiple(compute_dtype)

    # Tile picks (dtype- and VMEM-aware). Score tile defaults to (256, 256).
    if tq is None:
        tq_target = 256 if C < 4096 else 128        # x tile is (tq, C)
        if B == 1 and T >= 2 * row_mult:
            tq_target = min(tq_target, T // 2)      # keep >=2 parallel steps (v7x 2 TCs)
        tq = _pick_tile(T, tq_target, row_mult)
    if ts is None:
        ts = _pick_tile(S, 256, row_mult)           # K/V tiles are (ts, Hp), C-independent
    tsp = _pick_tile(S, 512 if C <= 2048 else 256, row_mult)
    nq, ns = T // tq, S // ts

    # ---------------- K/V projection (one pass over context) ----------------
    proj_cost = pl.CostEstimate(
        flops=int(4 * B * S * C * hp),
        transcendentals=0,
        bytes_accessed=int(B * S * C * in_item + 2 * C * hp * in_item
                           + 2 * B * S * hp * in_item),
    )
    k_proj, v_proj = pl.pallas_call(
        _kv_proj_kernel,
        out_shape=(jax.ShapeDtypeStruct((B, S, hp), compute_dtype),
                   jax.ShapeDtypeStruct((B, S, hp), compute_dtype)),
        grid_spec=pltpu.PrefetchScalarGridSpec(
            num_scalar_prefetch=0,
            grid=(B, S // tsp),
            in_specs=[
                pl.BlockSpec((1, tsp, C), lambda b, si: (b, si, 0)),
                pl.BlockSpec((C, 2 * hp), lambda b, si: (0, 0)),
            ],
            out_specs=[
                pl.BlockSpec((1, tsp, hp), lambda b, si: (b, si, 0)),
                pl.BlockSpec((1, tsp, hp), lambda b, si: (b, si, 0)),
            ],
        ),
        compiler_params=pltpu.CompilerParams(
            dimension_semantics=("parallel", "parallel"),
            vmem_limit_bytes=_vmem_limit(_proj_vmem_bytes(tsp, C, hp, in_item))),
        cost_estimate=proj_cost,
    )(ctx_c, wkv_c)

    # ---------------- Flash attention over the pre-projected K/V ------------
    flash_cost = pl.CostEstimate(
        flops=int(2 * B * T * C * hp + 4 * B * T * S * hp),
        transcendentals=int(B * T * S),
        bytes_accessed=int(B * T * C * in_item + nq * 2 * B * S * hp * in_item
                           + C * hp * in_item + B * T * hp * out_item),
    )
    out = pl.pallas_call(
        _flash_cross_attn_kernel,
        out_shape=jax.ShapeDtypeStruct((B, T, hp), out_dtype),
        grid_spec=pltpu.PrefetchScalarGridSpec(
            num_scalar_prefetch=0,
            grid=(B, nq, ns),
            in_specs=[
                pl.BlockSpec((1, tq, C), lambda b, qi, si: (b, qi, 0)),
                pl.BlockSpec((1, ts, hp), lambda b, qi, si: (b, si, 0)),
                pl.BlockSpec((1, ts, hp), lambda b, qi, si: (b, si, 0)),
                # Constant-index weight block (small; default buffering kept).
                pl.BlockSpec((C, hp), lambda b, qi, si: (0, 0)),
            ],
            out_specs=pl.BlockSpec((1, tq, hp), lambda b, qi, si: (b, qi, 0)),
            scratch_shapes=[
                pltpu.VMEM((tq, hp), compute_dtype),   # q (scale folded into wq)
                pltpu.VMEM((tq, 1), jnp.float32),      # running max
                pltpu.VMEM((tq, 1), jnp.float32),      # running denominator
                pltpu.VMEM((tq, hp), jnp.float32),     # output accumulator
            ],
        ),
        compiler_params=pltpu.CompilerParams(
            dimension_semantics=("parallel", "parallel", "arbitrary"),
            vmem_limit_bytes=_vmem_limit(
                _flash_vmem_bytes(tq, ts, C, hp, in_item, out_item))),
        cost_estimate=flash_cost,
    )(x_c, k_proj, v_proj, wq_c)

    return out[..., :H] if hp != H else out


# --------------------------------------------------------------------------
# Reference & demo
# --------------------------------------------------------------------------
def reference(x, context, wq, wk, wv):
    """Plain-JAX f32 reference mirroring the PyTorch forward (eval mode)."""
    C = x.shape[-1]
    q = x @ wq
    k = context @ wk
    v = context @ wv
    w = jnp.einsum("btc,bsc->bts", q, k) / math.sqrt(float(C))
    w = jax.nn.softmax(w, axis=-1)
    return jnp.einsum("bts,bsh->bth", w, v)


if __name__ == "__main__":
    # Small, module-consistent shapes.
    B, T, S = 2, 8, 16            # batch, query length, context length
    embed_size, head_size = 32, 32

    key = jax.random.PRNGKey(0)
    kx, kc, kq, kk, kv = jax.random.split(key, 5)

    x = jax.random.normal(kx, (B, T, embed_size), dtype=jnp.float32)
    context = jax.random.normal(kc, (B, S, embed_size), dtype=jnp.float32)

    # Deterministic "linear" weights, stored as (embed_size, head_size)
    # (transpose of the PyTorch nn.Linear weight of shape (H, C)).
    bound = 1.0 / math.sqrt(embed_size)
    wq = jax.random.uniform(kq, (embed_size, head_size), jnp.float32, -bound, bound)
    wk = jax.random.uniform(kk, (embed_size, head_size), jnp.float32, -bound, bound)
    wv = jax.random.uniform(kv, (embed_size, head_size), jnp.float32, -bound, bound)

    out = cross_attention_head(x, context, wq, wk, wv)
    out = jax.block_until_ready(out)
    assert out.shape == (B, T, head_size)

    # bf16 MXU compute path (per perf review) -> wider tolerance vs the pure
    # f32 reference; a second check against a reference whose inputs are
    # rounded to bf16 isolates the kernel math from input quantization.
    ref = reference(x, context, wq, wk, wv)
    err = float(jnp.max(jnp.abs(out - ref)))
    assert jnp.allclose(out, ref, atol=5e-2, rtol=5e-2), \
        f"mismatch vs f32 reference (max abs err {err:.4f})"

    to_bf = lambda a: a.astype(jnp.bfloat16).astype(jnp.float32)
    ref_bf = reference(to_bf(x), to_bf(context), to_bf(wq), to_bf(wk), to_bf(wv))
    err_bf = float(jnp.max(jnp.abs(out - ref_bf)))
    assert jnp.allclose(out, ref_bf, atol=2e-2, rtol=2e-2), \
        f"mismatch vs bf16-input reference (max abs err {err_bf:.4f})"

    print("KERNEL_OK")
</pallas_src>

<mosaic_0001>
module attributes {stable_mosaic.version = 11 : i64} {
  func.func @_kv_proj_kernel(%arg0: i32, %arg1: i32, %arg2: memref<1x16x32xbf16, #tpu.memory_space<vmem>>, %arg3: memref<32x256xbf16, #tpu.memory_space<vmem>>, %arg4: memref<1x16x128xbf16, #tpu.memory_space<vmem>>, %arg5: memref<1x16x128xbf16, #tpu.memory_space<vmem>>) attributes {dimension_semantics = [#tpu.dimension_semantics<parallel>, #tpu.dimension_semantics<parallel>], iteration_bounds = array<i64: 2, 1>, scalar_prefetch = 0 : i64, scratch_operands = 0 : i64, tpu.core_type = #tpu.core_type<tc>, window_params = [{transform_indices = @transform_0, window_bounds = array<i64: 1, 16, 32>}, {pipeline_mode = #tpu.pipeline_mode<synchronous>, transform_indices = @transform_1, window_bounds = array<i64: 32, 256>}, {transform_indices = @transform_2, window_bounds = array<i64: 1, 16, 128>}, {transform_indices = @transform_3, window_bounds = array<i64: 1, 16, 128>}]} {
    %c0 = arith.constant 0 : index
    %c0_0 = arith.constant 0 : index
    %c0_1 = arith.constant 0 : index
    %0 = vector.load %arg2[%c0, %c0_0, %c0_1] : memref<1x16x32xbf16, #tpu.memory_space<vmem>>, vector<1x16x32xbf16>
    %1 = vector.shape_cast %0 : vector<1x16x32xbf16> to vector<16x32xbf16>
    %c0_2 = arith.constant 0 : index
    %c0_3 = arith.constant 0 : index
    %2 = vector.load %arg3[%c0_2, %c0_3] : memref<32x256xbf16, #tpu.memory_space<vmem>>, vector<32x256xbf16>
    %cst = arith.constant dense<0.000000e+00> : vector<16x256xf32>
    %3 = tpu.matmul %1, %2, %cst {dimension_numbers = #tpu.dot_dimension_numbers<[1], [0], [0], [1], [0, 0, 1, 1], [], []>} : vector<16x32xbf16>, vector<32x256xbf16>, vector<16x256xf32> -> vector<16x256xf32>
    %4 = vector.extract_strided_slice %3 {offsets = [0, 0], sizes = [16, 128], strides = [1, 1]} : vector<16x256xf32> to vector<16x128xf32>
    %5 = arith.truncf %4 : vector<16x128xf32> to vector<16x128xbf16>
    %c0_4 = arith.constant 0 : index
    %c0_5 = arith.constant 0 : index
    %c0_6 = arith.constant 0 : index
    %6 = vector.load %arg4[%c0_4, %c0_5, %c0_6] : memref<1x16x128xbf16, #tpu.memory_space<vmem>>, vector<1x16x128xbf16>
    %7 = vector.shape_cast %6 : vector<1x16x128xbf16> to vector<16x128xbf16>
    %8 = vector.shape_cast %5 : vector<16x128xbf16> to vector<1x16x128xbf16>
    tpu.vector_store %arg4[%c0_4, %c0_5, %c0_6], %8 {strides = array<i32>} : memref<1x16x128xbf16, #tpu.memory_space<vmem>>, vector<1x16x128xbf16>,
    %9 = vector.extract_strided_slice %3 {offsets = [0, 128], sizes = [16, 128], strides = [1, 1]} : vector<16x256xf32> to vector<16x128xf32>
    %10 = arith.truncf %9 : vector<16x128xf32> to vector<16x128xbf16>
    %c0_7 = arith.constant 0 : index
    %c0_8 = arith.constant 0 : index
    %c0_9 = arith.constant 0 : index
    %11 = vector.load %arg5[%c0_7, %c0_8, %c0_9] : memref<1x16x128xbf16, #tpu.memory_space<vmem>>, vector<1x16x128xbf16>
    %12 = vector.shape_cast %11 : vector<1x16x128xbf16> to vector<16x128xbf16>
    %13 = vector.shape_cast %10 : vector<16x128xbf16> to vector<1x16x128xbf16>
    tpu.vector_store %arg5[%c0_7, %c0_8, %c0_9], %13 {strides = array<i32>} : memref<1x16x128xbf16, #tpu.memory_space<vmem>>, vector<1x16x128xbf16>,
    return
  }
  func.func @transform_0(%arg0: i32, %arg1: i32) -> (i32, i32, i32) {
    %c0_i32 = arith.constant 0 : i32
    %c0_i32_0 = arith.constant 0 : i32
    return %arg0, %arg1, %c0_i32 : i32, i32, i32
  }
  func.func @transform_1(%arg0: i32, %arg1: i32) -> (i32, i32) {
    %c0_i32 = arith.constant 0 : i32
    %c0_i32_0 = arith.constant 0 : i32
    %c0_i32_1 = arith.constant 0 : i32
    return %c0_i32, %c0_i32_0 : i32, i32
  }
  func.func @transform_2(%arg0: i32, %arg1: i32) -> (i32, i32, i32) {
    %c0_i32 = arith.constant 0 : i32
    %c0_i32_0 = arith.constant 0 : i32
    return %arg0, %arg1, %c0_i32 : i32, i32, i32
  }
  func.func @transform_3(%arg0: i32, %arg1: i32) -> (i32, i32, i32) {
    %c0_i32 = arith.constant 0 : i32
    %c0_i32_0 = arith.constant 0 : i32
    return %arg0, %arg1, %c0_i32 : i32, i32, i32
  }
}

</mosaic_0001>

<bundles_post_ra>
// kernel: tpu_custom_call.1
= control target key start
LH: loop header
LB: loop body
LE: loop exit
PB: predicated region body
PF: predicated region fallthrough
CT: control target
= control target key end

     0   :  { %9 = vsyncpa [#allocation3], 0  ;;  %s1073_s0 = inlined_call_operand.hbm [shape: bf16[2,16,32], index: 0, kind: input, shape index: {}]   ;;  %s1074_s1 = inlined_call_operand.hbm [shape: bf16[32,256], index: 1, kind: input, shape index: {}]   ;;  %s1075_s2 = inlined_call_operand.hbm [shape: bf16[2,16,128], index: 2, kind: output, shape index: {0}]   ;;  %s1076_s3 = inlined_call_operand.hbm [shape: bf16[2,16,128], index: 3, kind: output, shape index: {1}]  }
   0x1   :  { %11 = vsyncpa [#allocation3 + $0x1], 0 }
   0x2   :  { %12 = vsyncpa [#allocation6], 0 }
   0x3   :  { %13 = vsyncpa [#allocation4], 0 }
   0x4   :  { %15 = vsyncpa [#allocation4 + $0x1], 0 }
   0x5   :  { %16 = vsyncpa [#allocation9], 0 }
   0x6   :  { %18 = vsyncpa [#allocation9 + $0x1], 0  ;;  %s849_s12 = smov 0   ;;  %s851_s13 = smov 0  }
   0x7   :  { %s853_s14 = smov 0   ;;  %s855_s15 = smov 0  }
   0x8   :  { %s857_s16 = smov 0   ;;  %s859_s17 = smov 0  }
   0x9 LB: > { %s508_s18 = sadd.s32 4294967295, %s816_s17   ;;  %s509_s19 = sadd.s32 4294967294, %s816_s17   ;;  %s816_s17 = sphi %s859_s17, %s24_s17   ;;  %s812_s16 = sphi %s857_s16, %s1094_s16   ;;  %s808_s15 = sphi %s855_s15, %s1093_s15   ;;  %s804_s14 = sphi %s853_s14, %s1092_s14   ;;  %s800_s13 = sphi %s851_s13, %s1091_s13   ;;  %s796_s12 = sphi %s849_s12, %s1090_s12  }
   0xa   : > { %p58_p0 = scmp.ne.s32.totalorder %s800_s13, %s796_s12  ;;  %p883_p1 = scmp.eq.s32.totalorder %s508_s18, 0 }
   0xb   : > { %p887_p2 = scmp.eq.s32.totalorder %s508_s18, 1  ;;  %p111_p3 = scmp.eq.s32.totalorder %s509_s19, 1 }
   0xc   : > { %p893_p4 = por %p883_p1, %p58_p0  ;;  %p510_p5 = scmp.ge.s32.totalorder %s816_s17, 1 }
   0xd   : > { %p898_p6 = por %p111_p3, %p58_p0  ;;  %p146_p7 = scmp.lt.s32.totalorder %s816_s17, 3 }
   0xe   : > { %s1080_s22 = scalar_select %p893_p4, 1, 0 }
   0xf   : > { %s1081_s23 = scalar_select %p898_p6, 1, 0 }
  0x10   : > { %p903_p8 = pnand %p510_p5, %p146_p7  ;;  %s818_s25 = smov [#allocation5]  }
  0x11   : > { %s158_s26 = sshll.u32 %s818_s25, 4  ;;  %s36_s28 = sadd.s32 1, %s812_s16  ;;  %s159_s26 = int_to_ptr.vmem [resolvable:$true] %s158_s26 }
  0x12   : > { %p566_p9 = pneg %p903_p8  ;;  %s659_s29 = scalar_lea.vmem %s159_s26, 512 }
  0x13   : > { %p660_p13 = scmp.ne.s32.totalorder %s159_s26, %s659_s29  ;;  %p667_p5 = scmp.lt.s32.totalorder %s159_s26, %s159_s26 }
  0x14   : > { %p912_p11 = pnand %p566_p9, %p883_p1  ;;  %p668_p7 = scmp.lt.s32.totalorder %s659_s29, %s659_s29 }
  0x16   : > { %p650_p12 = pneg %p912_p11  ;;  %p669_p6 = por %p668_p7, %p667_p5 }
  0x18   : > { %p662_p0 = pnand %p660_p13, %p650_p12 }
  0x1a   : > { %p663_p3 = pneg %p662_p0 }
  0x1c   : > { %p670_p4 = pnand %p669_p6, %p663_p3 }
  0x1e   : > { %673 = shalt.err (!%p670_p4)
}
  0x1f   : > { %s819_s30 = smov 128   ;;  %s820_s4 = smov 8  }
  0x20   : > { %569 = dma.hbm_to_vmem [thread:$0]  (!%p912_p11), %s1074_s1, 512, %s159_s26, [#allocation6], %s819_s30, %s819_s30, %s820_s4  }
  0x21   : > { %p38_p6 = scmp.ge.s32.totalorder %s36_s28, 2  ;;  %s45_s7 = sadd.s32 1, %s804_s14 }
  0x22   : > { %p52_p4 = scmp.ne.s32.totalorder %s804_s14, %s800_s13  ;;  %p53_p9 = scmp.eq.s32.totalorder %s816_s17, 0 }
  0x23   : > { %s1096_s28 = smov (%p38_p6, %s36_s28), 0  ;;  %p582_p0 = scmp.lt.s32.totalorder %s816_s17, 2 }
  0x24   : > { %p930_p12 = por %p53_p9, %p52_p4  ;;  %p936_p13 = por %p887_p2, %p52_p4 }
  0x25   : > { %s40_s10 = ssub.s32 %s812_s16, %s1096_s28  ;;  %s172_s11 = sand.u32 1, %s804_s14  }
  0x26   : > { %p43_p11 = scmp.eq.s32.totalorder %s40_s10, 0  ;;  %s513_s18 = sshll.u32 %s172_s11, 3 }
  0x27   : > { %s539_s25 = sshll.u32 %s812_s16, 7  ;;  %s176_s30 = scalar_lea.vmem [#allocation2], %s513_s18 }
  0x28   : > { %s945_s19 = scalar_select %p43_p11, %s804_s14, %s45_s7  }
  0x29   : > { %s184_s29 = scalar_lea.hbm %s1073_s0, %s539_s25  ;;  %s185_s4 = sshll.u32 %s176_s30, 4  ;;  %s186_s4 = int_to_ptr.vmem [resolvable:$true] %s185_s4 }
  0x2a   : > { %p953_p2 = pnand %p582_p0, %p930_p12  ;;  %s173_s5 = scalar_lea.sflag [#allocation3], %s172_s11 }
  0x2b   : > { %s687_s6 = scalar_lea.vmem %s186_s4, 128  ;;  %s821_s7 = smov [#allocation2]  }
  0x2c   : > { %p676_p3 = pneg %p953_p2  ;;  %p688_p5 = scmp.ne.s32.totalorder %s186_s4, %s687_s6 }
  0x2d   : > { %s692_s10 = sshll.u32 %s821_s7, 4  ;;  %s693_s10 = int_to_ptr.vmem [resolvable:$false] %s692_s10 }
  0x2e   : > { %p690_p7 = pnand %p688_p5, %p676_p3  ;;  %s694_s25 = scalar_lea.vmem %s693_s10, 256 }
  0x2f   : > { %p695_p4 = scmp.lt.s32.totalorder %s186_s4, %s693_s10  ;;  %p696_p9 = scmp.lt.s32.totalorder %s694_s25, %s687_s6 }
  0x30   : > { %p691_p6 = pneg %p690_p7 }
  0x31   : > { %p697_p11 = por %p696_p9, %p695_p4 }
  0x33   : > { %p698_p10 = pnand %p697_p11, %p691_p6 }
  0x35   : > { %701 = shalt.err (!%p698_p10)
}
  0x36   : > { %s822_s8 = smov 64   ;;  %s823_s18 = smov 4  }
  0x37   : > { %573 = dma.hbm_to_vmem [thread:$0]  (!%p953_p2), %s184_s29, 128, %s186_s4, %s173_s5, %s822_s8, %s822_s8, %s823_s18  }
  0x38   : > { %197 = sbr.rel (%p903_p8) target bundleno = 308 (0x134), region = 28  ;;  %s964_s11 = sand.u32 (!%p903_p8), 1, %s800_s13  }
  0x39   : > { %s967_s26 = sshll.u32 (!%p903_p8), %s964_s11, 3  ;;  %s200_s27 = scalar_lea.sflag (!%p903_p8), [#allocation3], %s964_s11 }
  0x3a   : > { %s203_s30 = scalar_lea.vmem (!%p903_p8), [#allocation2], %s967_s26  ;;  %p1087_p10 = scmp.ne.s32.totalorder (!%p903_p8), %s1080_s22, 0 }
  0x3d   : > { %779 = dma.done.wait (%p1087_p10), %s200_s27, 128  }
  0x3e   : > { %781 = vsyncadd (%p1087_p10), %s200_s27, 4294967168 }
  0x3f   : > { %783 = dma.done.wait (%p883_p1), [#allocation6], 512  }
  0x40   : > { %785 = vsyncadd (%p883_p1), [#allocation6], 4294966784  ;;  %v824_v0 = vmov 0   ;;  %v641_v1 = vld [vmem:[#allocation5 + $0x14] ss:$8 sps:$4 sm:$0xff]   ;;  %vm270_vm0 = vcmask 261120  }
  0x41   : > { %306 = vmatprep.mubr.bf16.mxu0 %v824_v0  ;;  %v643_v2 = vld [vmem:[#allocation5 + $0x10] ss:$8 sps:$4 sm:$0xff]   ;;  %286 = vmatprep.subr.bf16.mxu0 %v641_v1  ;;  %v644_v3 = vld [vmem:[#allocation5 + $0x4] ss:$8 sps:$4 sm:$0xff]   ;;  %v646_v4 = vld [vmem:[#allocation5] ss:$8 sps:$4 sm:$0xff]  }
  0x42   : > { %287 = vmatpush1.bf16.msra.mxu0 %v643_v2  ;;  %v647_v5 = vld [vmem:[%s203_s30] sm:$0xff]   ;;  %s227_s20 = scalar_lea.vmem [#allocation7], %s967_s26  ;;  %s544_s24 = sshll.u32 %s808_s15, 7 }
  0x43   : > { %288 = vmatprep.subr.bf16.mxu0 %v644_v3  ;;  %s358_s22 = sshll.u32 %s227_s20, 4  ;;  %s234_s29 = scalar_lea.vmem [#allocation8], %s967_s26  ;;  %s981_s22 = int_to_ptr.vmem [resolvable:$true] %s358_s22 }
  0x44   : > { %s376_s4 = sshll.u32 %s234_s29, 4  ;;  %s989_s6 = scalar_lea.hbm %s1075_s2, %s544_s24  ;;  %s991_s4 = int_to_ptr.vmem [resolvable:$true] %s376_s4 }
  0x45   : > { %s996_s10 = scalar_lea.hbm %s1076_s3, %s544_s24  ;;  %s338_s25 = scalar_lea.sflag [#allocation4], %s964_s11 }
  0x46   : > { %289 = vmatpush1.bf16.msra.mxu0 %v646_v4  ;;  %s702_s8 = scalar_lea.vmem %s981_s22, 128  ;;  %s825_s18 = smov [#allocation7]  }
  0x47   : > { %p703_p1 = scmp.ne.s32.totalorder %s981_s22, %s702_s8  ;;  %s706_s27 = sshll.u32 %s825_s18, 4  ;;  %s707_s27 = int_to_ptr.vmem [resolvable:$false] %s706_s27 }
  0x48   : > { %s708_s30 = scalar_lea.vmem %s707_s27, 256  ;;  %p709_p0 = scmp.lt.s32.totalorder %s981_s22, %s707_s27 }
  0x49   : > { %526 = vmatmul.mubr.msk.bf16.vlgmr.msra.gmra.mxu0 %vm270_vm0, %v647_v5  ;;  %p704_p8 = pnand %p703_p1, %p936_p13  ;;  %p710_p2 = scmp.lt.s32.totalorder %s708_s30, %s702_s8 }
  0x4b   : > { %p705_p12 = pneg %p704_p8  ;;  %p711_p3 = por %p710_p2, %p709_p0 }
  0x4d   : > { %p712_p5 = pnand %p711_p3, %p705_p12 }
 0x109   : > { %v308_v6 = vpop.f32.mrf.mxu0 }
 0x10b   : > { %v310_v7 = vpop.f32.mrf.mxu0 }
 0x10d   : > { %v312_v8 = vpop.f32.mrf.mxu0 }
 0x10e   : > { %v549_v9 = vpack.c.bf16 %v312_v8, %v308_v6 }
 0x10f   : > { %v314_v10 = vpop.f32.mrf.mxu0 }
 0x110   : > { %550 = vst [vmem:[%s227_s20] sm:$0xff] %v549_v9   ;;  %v554_v11 = vpack.c.bf16 %v314_v10, %v310_v7 }
 0x111   : > { %715 = shalt.err (!%p712_p5)
}
 0x112   : > { %s716_s20 = scalar_lea.hbm %s989_s6, 128  ;;  %s720_s5 = scalar_lea.hbm %s1075_s2, 256 }
 0x113   : > { %p717_p7 = scmp.ne.s32.totalorder %s989_s6, %s716_s20  ;;  %p721_p9 = scmp.lt.s32.totalorder %s989_s6, %s1075_s2 }
 0x114   : > { %p722_p11 = scmp.lt.s32.totalorder %s720_s5, %s716_s20 }
 0x115   : > { %p718_p6 = pnand %p717_p7, %p936_p13 }
 0x116   : > { %p723_p10 = por %p722_p11, %p721_p9 }
 0x117   : > { %p719_p4 = pneg %p718_p6 }
 0x119   : > { %p724_p1 = pnand %p723_p10, %p719_p4 }
 0x11b   : > { %727 = shalt.err (!%p724_p1)
}
 0x11c   : > { %s826_s8 = smov 64   ;;  %s827_s18 = smov 4   ;;  %555 = vst [vmem:[%s234_s29] sm:$0xff] %v554_v11  }
 0x11d   : > { %562 = dma.vmem_to_hbm [thread:$0]  (%p936_p13), %s981_s22, 128, %s989_s6, %s338_s25, %s826_s8, %s826_s8, %s827_s18  }
 0x11e   : > { %s343_s27 = scalar_lea.sflag [#allocation9], %s964_s11  ;;  %s728_s30 = scalar_lea.vmem %s991_s4, 128 }
 0x11f   : > { %p729_p8 = scmp.ne.s32.totalorder %s991_s4, %s728_s30  ;;  %s828_s20 = smov [#allocation8]  }
 0x120   : > { %s732_s24 = sshll.u32 %s828_s20, 4  ;;  %s733_s24 = int_to_ptr.vmem [resolvable:$false] %s732_s24 }
 0x121   : > { %p730_p12 = pnand %p729_p8, %p936_p13  ;;  %s734_s21 = scalar_lea.vmem %s733_s24, 256 }
 0x122   : > { %p735_p2 = scmp.lt.s32.totalorder %s991_s4, %s733_s24  ;;  %p736_p3 = scmp.lt.s32.totalorder %s734_s21, %s728_s30 }
 0x123   : > { %p731_p0 = pneg %p730_p12 }
 0x124   : > { %p737_p5 = por %p736_p3, %p735_p2 }
 0x126   : > { %p738_p7 = pnand %p737_p5, %p731_p0 }
 0x128   : > { %741 = shalt.err (!%p738_p7)
}
 0x129   : > { %s742_s26 = scalar_lea.hbm %s996_s10, 128  ;;  %s746_s29 = scalar_lea.hbm %s1076_s3, 256 }
 0x12a   : > { %p743_p6 = scmp.ne.s32.totalorder %s996_s10, %s742_s26  ;;  %p747_p11 = scmp.lt.s32.totalorder %s996_s10, %s1076_s3 }
 0x12b   : > { %p748_p10 = scmp.lt.s32.totalorder %s746_s29, %s742_s26 }
 0x12c   : > { %p744_p4 = pnand %p743_p6, %p936_p13 }
 0x12d   : > { %p749_p1 = por %p748_p10, %p747_p11 }
 0x12e   : > { %p745_p9 = pneg %p744_p4 }
 0x130   : > { %p750_p8 = pnand %p749_p1, %p745_p9 }
 0x132   : > { %753 = shalt.err (!%p750_p8)
}
 0x133   : > { %563 = dma.vmem_to_hbm [thread:$0]  (%p936_p13), %s991_s4, 128, %s996_s10, %s343_s27, %s826_s8, %s826_s8, %s827_s18  }
 0x134 PF: > { %s391_s5 = sand.u32 1, %s796_s12   ;;  %p1088_p12 = scmp.ne.s32.totalorder %s1081_s23, 0 }
 0x135   : > { %p1089_p0 = scmp.ge.s32.totalorder %s816_s17, 2  ;;  %s392_s15 = scalar_lea.sflag [#allocation4], %s391_s5 }
 0x137   : > { %p575_p2 = pnand %p1089_p0, %p1088_p12 }
 0x139   : > { %p576_p3 = pneg %p575_p2 }
 0x13b   : > { %787 = dma.done.wait (%p576_p3), %s392_s15, 128  }
 0x13c   : > { %789 = vsyncadd (%p576_p3), %s392_s15, 4294967168  ;;  %s401_s7 = scalar_lea.sflag [#allocation9], %s391_s5 }
 0x13d   : > { %791 = dma.done.wait (%p576_p3), %s401_s7, 128  }
 0x13e   : > { %793 = vsyncadd (%p576_p3), %s401_s7, 4294967168  ;;  %s24_s17 = sadd.s32 1, %s816_s17   ;;  %s1090_s12 = smov %s800_s13 }
 0x13f   : > { %p21_p5 = scmp.ge.s32.totalorder %s24_s17, 4   ;;  %s1091_s13 = smov %s804_s14 }
 0x140   : > { %s1092_s14 = smov %s945_s19  ;;  %s1093_s15 = smov %s812_s16 }
 0x141   : > { %s1094_s16 = smov %s1096_s28  ;;  %23 = sbr.rel (!%p21_p5) target bundleno = 9 (0x9), region = 94 }
 0x146   :  { %406 = vsyncpa [#allocation3], 1 }
 0x147   :  { %408 = vsyncpa [#allocation3 + $0x1], 1 }
 0x148   :  { %409 = vsyncpa [#allocation6], 1 }
 0x149   :  { %410 = vsyncpa [#allocation4], 1 }
 0x14a   :  { %412 = vsyncpa [#allocation4 + $0x1], 1 }
 0x14b   :  { %413 = vsyncpa [#allocation9], 1 }
 0x14c   :  { %415 = vsyncpa [#allocation9 + $0x1], 1 }

</bundles_post_ra>
